<compile_context>
chip_gen: v5e
topology: v5e:2x2
jax: 0.10.0
libtpu: 0.0.40
codegen_flags: <defaults>
</compile_context>

<pallas_src>
import functools
import math

import jax
import jax.numpy as jnp
from jax.experimental import pallas as pl
from jax.experimental.pallas import tpu as pltpu


def _transformer_block_kernel(
    x_q_ref, mask_ref, k_ref, v_ref,
    wq_ref, bq_ref, wo_ref, bo_ref,
    ln1g_ref, ln1b_ref,
    w1_ref, b1_ref, w2_ref, b2_ref,
    ln2g_ref, ln2b_ref,
    out_ref,
    *, heads: int, eps: float, concat_heads: bool,
):
    TQ, E = x_q_ref.shape
    S = k_ref.shape[1]
    dh = E // heads
    scale = 1.0 / math.sqrt(dh)

    x_q = x_q_ref[...]                                    # (TQ, E) f32

    # Additive mask bias, computed ONCE (hoisted out of the head loop).
    # NOTE: rows that have at least one unmasked position match the reference
    # exactly (exp(-1e10) underflows to 0 either way); fully-masked rows would
    # differ from the reference's uniform fallback (both are meaningless).
    m = mask_ref[...]                                     # (1, S)
    bias = jnp.where(m > 0.0, 0.0, jnp.float32(-1e10))    # (1, S)

    # ---- Q projection (bf16 MXU operands, f32 accumulation), pre-scaled once.
    q = jnp.dot(x_q.astype(jnp.bfloat16), wq_ref[...],
                preferred_element_type=jnp.float32) + bq_ref[0]
    q = q * scale                                         # (TQ, E) f32

    # ---- multi-head attention -----------------------------------------------
    # K/V are ref-sliced per head: only one (S, dh) bf16 slab is live at a time.
    ctx_heads = []
    for h in range(heads):                                # heads is small/static
        qh = q[:, h * dh:(h + 1) * dh].astype(jnp.bfloat16)       # (TQ, dh)
        kh = k_ref[h]                                             # (S, dh) bf16
        vh = v_ref[h]                                             # (S, dh) bf16
        # contract over dh on both operands: no materialized transpose of K
        energy = jax.lax.dot_general(
            qh, kh, (((1,), (1,)), ((), ())),
            preferred_element_type=jnp.float32) + bias            # (TQ, S)
        emax = jnp.max(energy, axis=-1, keepdims=True)
        p = jnp.exp(energy - emax)
        p = p * pl.reciprocal(jnp.sum(p, axis=-1, keepdims=True), approx=True)
        ctx_heads.append(jnp.dot(p.astype(jnp.bfloat16), vh,
                                 preferred_element_type=jnp.float32))  # (TQ, dh)

    if concat_heads:
        # dh % 128 == 0: lane-aligned concat is free; one output projection
        # with full-E contraction depth fills the MXU.  wo_ref is (E, E).
        ctx = jnp.concatenate(ctx_heads, axis=-1).astype(jnp.bfloat16)  # (TQ, E)
        attn_out = jnp.dot(ctx, wo_ref[...],
                           preferred_element_type=jnp.float32)
    else:
        # dh < 128: fold each head straight through its wo slice (proven path).
        # wo_ref is (heads, dh, E).
        # TODO(synk): batch heads in a single dot_general once q can be laid out
        # (H, TQ, dh) without a small-dh relayout.
        attn_out = jnp.zeros((TQ, E), jnp.float32)
        for h in range(heads):
            attn_out = attn_out + jnp.dot(
                ctx_heads[h].astype(jnp.bfloat16), wo_ref[h],
                preferred_element_type=jnp.float32)
    attn_out = attn_out + bo_ref[0]

    # ---- residual + LayerNorm 1 (f32 VPU math) -------------------------------
    r1 = x_q + attn_out
    mu1 = jnp.mean(r1, axis=-1, keepdims=True)
    var1 = jnp.mean(jnp.square(r1 - mu1), axis=-1, keepdims=True)
    y1 = (r1 - mu1) * jax.lax.rsqrt(var1 + eps) * ln1g_ref[0] + ln1b_ref[0]

    # ---- feed forward: Linear -> ReLU -> Linear ------------------------------
    h1 = jnp.dot(y1.astype(jnp.bfloat16), w1_ref[...],
                 preferred_element_type=jnp.float32) + b1_ref[0]
    h1 = jnp.maximum(h1, 0.0)
    ff = jnp.dot(h1.astype(jnp.bfloat16), w2_ref[...],
                 preferred_element_type=jnp.float32) + b2_ref[0]

    # ---- residual + LayerNorm 2 ----------------------------------------------
    r2 = y1 + ff
    mu2 = jnp.mean(r2, axis=-1, keepdims=True)
    var2 = jnp.mean(jnp.square(r2 - mu2), axis=-1, keepdims=True)
    y2 = (r2 - mu2) * jax.lax.rsqrt(var2 + eps) * ln2g_ref[0] + ln2b_ref[0]

    out_ref[...] = y2.astype(out_ref.dtype)


def _pick_q_tile(S):
    # 256 matches the 256-row MXU on v6e/v7x with far less VMEM/vreg pressure
    # than 512 (per review); fall back to the full sequence for tiny S.
    for cand in (256, 128):
        if S % cand == 0:
            return cand
    return S


def _vmem_limit_bytes():
    # Leave ~15% headroom for compiler internal scratch / semaphores:
    # ~54 MiB on v7x (64 MiB physical), ~108 MiB on v5e/v6e (128 MiB physical).
    try:
        cap = pltpu.get_tpu_info().vmem_capacity_bytes
        return int(cap * 0.85)
    except Exception:
        return 64 * 1024 * 1024


def _const_spec(shape):
    """Weight/bias/LN spec: constant index map, single-buffered."""
    nd = len(shape)
    return pl.BlockSpec(shape, lambda b, qi: (0,) * nd,
                        pipeline_mode=pl.Buffered(1))


def prepare_params(params):
    """One-time parameter prep (do NOT repeat per call): cast MXU operands to
    bf16.  wk/wv/bk/bv stay f32 — the K/V projection runs outside the kernel."""
    pp = dict(params)
    for name in ("wq", "wo", "w1", "w2"):
        pp[name] = params[name].astype(jnp.bfloat16)
    return pp


def transformer_block(x, mask, prepped, *, heads, eps=1e-5):
    """x: (B, S, E) f32, mask: (B, 1, S) f32 (1.0 keep / 0.0 mask).
    `prepped` comes from prepare_params()."""
    B, S, E = x.shape
    assert E % heads == 0
    dh = E // heads
    F = prepped["w1"].shape[1]

    # ---- K/V projection hoisted out of the kernel (plain XLA, f32 accum) -----
    # Result cast to bf16 and laid out head-major (B, H, S, dh) so the kernel
    # ref-slices one (S, dh) head at a time.
    k = (x @ prepped["wk"] + prepped["bk"])
    v = (x @ prepped["wv"] + prepped["bv"])
    k = k.reshape(B, S, heads, dh).transpose(0, 2, 1, 3).astype(jnp.bfloat16)
    v = v.reshape(B, S, heads, dh).transpose(0, 2, 1, 3).astype(jnp.bfloat16)

    TQ = _pick_q_tile(S)
    nq = S // TQ

    concat_heads = (dh % 128 == 0)
    if concat_heads:
        wo = prepped["wo"]                             # (E, E) bf16
        wo_spec = _const_spec((E, E))
    else:
        wo = prepped["wo"].reshape(heads, dh, E)       # head-major bf16
        wo_spec = _const_spec((heads, dh, E))

    in_specs = [
        pl.BlockSpec((pl.Squeezed(), TQ, E), lambda b, qi: (b, qi, 0)),       # x (query tile)
        pl.BlockSpec((pl.Squeezed(), 1, S), lambda b, qi: (b, 0, 0)),         # mask
        pl.BlockSpec((pl.Squeezed(), heads, S, dh), lambda b, qi: (b, 0, 0, 0)),  # K bf16
        pl.BlockSpec((pl.Squeezed(), heads, S, dh), lambda b, qi: (b, 0, 0, 0)),  # V bf16
        _const_spec((E, E)), _const_spec((1, E)),                             # wq, bq
        wo_spec, _const_spec((1, E)),                                         # wo, bo
        _const_spec((1, E)), _const_spec((1, E)),                             # ln1 gamma, beta
        _const_spec((E, F)), _const_spec((1, F)),                             # w1, b1
        _const_spec((F, E)), _const_spec((1, E)),                             # w2, b2
        _const_spec((1, E)), _const_spec((1, E)),                             # ln2 gamma, beta
    ]

    kernel = functools.partial(_transformer_block_kernel, heads=heads, eps=eps,
                               concat_heads=concat_heads)

    return pl.pallas_call(
        kernel,
        out_shape=jax.ShapeDtypeStruct((B, S, E), x.dtype),
        grid_spec=pltpu.PrefetchScalarGridSpec(
            num_scalar_prefetch=0,
            grid=(B, nq),
            in_specs=in_specs,
            out_specs=pl.BlockSpec((pl.Squeezed(), TQ, E), lambda b, qi: (b, qi, 0)),
        ),
        compiler_params=pltpu.CompilerParams(
            dimension_semantics=("parallel", "parallel"),   # no cross-step state
            vmem_limit_bytes=_vmem_limit_bytes(),
        ),
    )(
        x, mask, k, v,
        prepped["wq"], prepped["bq"], wo, prepped["bo"],
        prepped["ln1_g"], prepped["ln1_b"],
        prepped["w1"], prepped["b1"], prepped["w2"], prepped["b2"],
        prepped["ln2_g"], prepped["ln2_b"],
    )


def _reference(x, mask, params, *, heads, eps=1e-5):
    """Plain-JAX f32 reference of the same forward pass (sanity check)."""
    B, S, E = x.shape
    dh = E // heads
    q = x @ params["wq"] + params["bq"]
    k = x @ params["wk"] + params["bk"]
    v = x @ params["wv"] + params["bv"]

    def split(t):  # (B, S, E) -> (B, H, S, dh)
        return t.reshape(B, S, heads, dh).transpose(0, 2, 1, 3)

    qh, kh, vh = split(q), split(k), split(v)
    energy = jnp.einsum("bhqd,bhkd->bhqk", qh, kh) / math.sqrt(dh)
    m = mask[:, None, :, :]  # (B,1,1,S)
    energy = jnp.where(m > 0.0, energy, -1e10)
    p = jax.nn.softmax(energy, axis=-1)
    ctx = jnp.einsum("bhqk,bhkd->bhqd", p, vh).transpose(0, 2, 1, 3).reshape(B, S, E)
    attn = ctx @ params["wo"] + params["bo"]

    def ln(t, g, b):
        mu = t.mean(-1, keepdims=True)
        var = ((t - mu) ** 2).mean(-1, keepdims=True)
        return (t - mu) / jnp.sqrt(var + eps) * g + b

    y1 = ln(x + attn, params["ln1_g"], params["ln1_b"])
    ff = jnp.maximum(y1 @ params["w1"] + params["b1"], 0.0) @ params["w2"] + params["b2"]
    return ln(y1 + ff, params["ln2_g"], params["ln2_b"])


def init_params(key, embed_size, forward_expansion):
    E = embed_size
    F = E * forward_expansion
    keys = jax.random.split(key, 8)
    s = 0.02
    return {
        "wq": jax.random.normal(keys[0], (E, E), jnp.float32) * s,
        "wk": jax.random.normal(keys[1], (E, E), jnp.float32) * s,
        "wv": jax.random.normal(keys[2], (E, E), jnp.float32) * s,
        "wo": jax.random.normal(keys[3], (E, E), jnp.float32) * s,
        "bq": jnp.zeros((1, E), jnp.float32),
        "bk": jnp.zeros((1, E), jnp.float32),
        "bv": jnp.zeros((1, E), jnp.float32),
        "bo": jnp.zeros((1, E), jnp.float32),
        "ln1_g": jnp.ones((1, E), jnp.float32),
        "ln1_b": jnp.zeros((1, E), jnp.float32),
        "ln2_g": jnp.ones((1, E), jnp.float32),
        "ln2_b": jnp.zeros((1, E), jnp.float32),
        "w1": jax.random.normal(keys[4], (E, F), jnp.float32) * s,
        "b1": jnp.zeros((1, F), jnp.float32),
        "w2": jax.random.normal(keys[5], (F, E), jnp.float32) * s,
        "b2": jnp.zeros((1, E), jnp.float32),
    }


if __name__ == "__main__":
    B, S, E = 2, 8, 32
    heads = 4
    forward_expansion = 4

    key = jax.random.PRNGKey(0)
    kx, km, kp = jax.random.split(key, 3)

    x = jax.random.normal(kx, (B, S, E), jnp.float32)
    # mask: (B, 1, S); last position of batch 1 masked out, everything else kept
    mask = jnp.ones((B, 1, S), jnp.float32).at[1, 0, S - 1].set(0.0)

    params = init_params(kp, E, forward_expansion)
    prepped = prepare_params(params)           # one-time bf16 weight prep

    fwd = jax.jit(functools.partial(transformer_block, heads=heads))
    out = fwd(x, mask, prepped)
    out = jax.block_until_ready(out)

    ref = _reference(x, mask, params, heads=heads)
    assert out.shape == (B, S, E)
    # bf16 MXU operands + approx reciprocal -> looser tolerance vs f32 reference
    assert jnp.allclose(out, ref, rtol=2e-2, atol=2e-2), "mismatch vs reference"

    print("KERNEL_OK")
</pallas_src>

<mosaic_0001>
module attributes {stable_mosaic.version = 11 : i64} {
  func.func @_transformer_block_kernel(%arg0: i32, %arg1: i32, %arg2: memref<1x8x32xf32, #tpu.memory_space<vmem>>, %arg3: memref<1x1x8xf32, #tpu.memory_space<vmem>>, %arg4: memref<1x4x8x8xbf16, #tpu.memory_space<vmem>>, %arg5: memref<1x4x8x8xbf16, #tpu.memory_space<vmem>>, %arg6: memref<32x32xbf16, #tpu.memory_space<vmem>>, %arg7: memref<1x32xf32, #tpu.memory_space<vmem>>, %arg8: memref<4x8x32xbf16, #tpu.memory_space<vmem>>, %arg9: memref<1x32xf32, #tpu.memory_space<vmem>>, %arg10: memref<1x32xf32, #tpu.memory_space<vmem>>, %arg11: memref<1x32xf32, #tpu.memory_space<vmem>>, %arg12: memref<32x128xbf16, #tpu.memory_space<vmem>>, %arg13: memref<1x128xf32, #tpu.memory_space<vmem>>, %arg14: memref<128x32xbf16, #tpu.memory_space<vmem>>, %arg15: memref<1x32xf32, #tpu.memory_space<vmem>>, %arg16: memref<1x32xf32, #tpu.memory_space<vmem>>, %arg17: memref<1x32xf32, #tpu.memory_space<vmem>>, %arg18: memref<1x8x32xf32, #tpu.memory_space<vmem>>) attributes {dimension_semantics = [#tpu.dimension_semantics<parallel>, #tpu.dimension_semantics<parallel>], iteration_bounds = array<i64: 2, 1>, scalar_prefetch = 0 : i64, scratch_operands = 0 : i64, tpu.core_type = #tpu.core_type<tc>, window_params = [{transform_indices = @transform_0, window_bounds = array<i64: 1, 8, 32>}, {transform_indices = @transform_1, window_bounds = array<i64: 1, 1, 8>}, {transform_indices = @transform_2, window_bounds = array<i64: 1, 4, 8, 8>}, {transform_indices = @transform_3, window_bounds = array<i64: 1, 4, 8, 8>}, {pipeline_mode = #tpu.pipeline_mode<synchronous>, transform_indices = @transform_4, window_bounds = array<i64: 32, 32>}, {pipeline_mode = #tpu.pipeline_mode<synchronous>, transform_indices = @transform_5, window_bounds = array<i64: 1, 32>}, {pipeline_mode = #tpu.pipeline_mode<synchronous>, transform_indices = @transform_6, window_bounds = array<i64: 4, 8, 32>}, {pipeline_mode = #tpu.pipeline_mode<synchronous>, transform_indices = @transform_7, window_bounds = array<i64: 1, 32>}, {pipeline_mode = #tpu.pipeline_mode<synchronous>, transform_indices = @transform_8, window_bounds = array<i64: 1, 32>}, {pipeline_mode = #tpu.pipeline_mode<synchronous>, transform_indices = @transform_9, window_bounds = array<i64: 1, 32>}, {pipeline_mode = #tpu.pipeline_mode<synchronous>, transform_indices = @transform_10, window_bounds = array<i64: 32, 128>}, {pipeline_mode = #tpu.pipeline_mode<synchronous>, transform_indices = @transform_11, window_bounds = array<i64: 1, 128>}, {pipeline_mode = #tpu.pipeline_mode<synchronous>, transform_indices = @transform_12, window_bounds = array<i64: 128, 32>}, {pipeline_mode = #tpu.pipeline_mode<synchronous>, transform_indices = @transform_13, window_bounds = array<i64: 1, 32>}, {pipeline_mode = #tpu.pipeline_mode<synchronous>, transform_indices = @transform_14, window_bounds = array<i64: 1, 32>}, {pipeline_mode = #tpu.pipeline_mode<synchronous>, transform_indices = @transform_15, window_bounds = array<i64: 1, 32>}, {transform_indices = @transform_16, window_bounds = array<i64: 1, 8, 32>}]} {
    %c0 = arith.constant 0 : index
    %c0_0 = arith.constant 0 : index
    %c0_1 = arith.constant 0 : index
    %0 = vector.load %arg2[%c0, %c0_0, %c0_1] : memref<1x8x32xf32, #tpu.memory_space<vmem>>, vector<1x8x32xf32>
    %1 = vector.shape_cast %0 : vector<1x8x32xf32> to vector<8x32xf32>
    %c0_2 = arith.constant 0 : index
    %c0_3 = arith.constant 0 : index
    %c0_4 = arith.constant 0 : index
    %2 = vector.load %arg3[%c0_2, %c0_3, %c0_4] : memref<1x1x8xf32, #tpu.memory_space<vmem>>, vector<1x1x8xf32>
    %3 = vector.shape_cast %2 : vector<1x1x8xf32> to vector<1x8xf32>
    %cst = arith.constant 0.000000e+00 : f32
    %4 = vector.broadcast %cst : f32 to vector<1x8xf32>
    %5 = arith.cmpf ogt, %3, %4 : vector<1x8xf32>
    %cst_5 = arith.constant 0.000000e+00 : f32
    %cst_6 = arith.constant -1.000000e+10 : f32
    %6 = vector.broadcast %cst_5 : f32 to vector<1x8xf32>
    %7 = vector.broadcast %cst_6 : f32 to vector<1x8xf32>
    %8 = arith.select %5, %6, %7 : vector<1x8xi1>, vector<1x8xf32>
    %9 = arith.truncf %1 : vector<8x32xf32> to vector<8x32xbf16>
    %c0_7 = arith.constant 0 : index
    %c0_8 = arith.constant 0 : index
    %10 = vector.load %arg6[%c0_7, %c0_8] : memref<32x32xbf16, #tpu.memory_space<vmem>>, vector<32x32xbf16>
    %cst_9 = arith.constant dense<0.000000e+00> : vector<8x32xf32>
    %11 = tpu.matmul %9, %10, %cst_9 {dimension_numbers = #tpu.dot_dimension_numbers<[1], [0], [0], [1], [0, 0, 1, 1], [], []>} : vector<8x32xbf16>, vector<32x32xbf16>, vector<8x32xf32> -> vector<8x32xf32>
    %c0_10 = arith.constant 0 : index
    %c0_11 = arith.constant 0 : index
    %12 = vector.load %arg7[%c0_10, %c0_11] : memref<1x32xf32, #tpu.memory_space<vmem>>, vector<1x32xf32>
    %13 = vector.shape_cast %12 : vector<1x32xf32> to vector<32xf32>
    %14 = vector.shape_cast %13 : vector<32xf32> to vector<1x32xf32>
    %15 = vector.broadcast %14 : vector<1x32xf32> to vector<8x32xf32>
    %16 = arith.addf %11, %15 : vector<8x32xf32>
    %cst_12 = arith.constant 0.353553385 : f32
    %17 = vector.broadcast %cst_12 : f32 to vector<8x32xf32>
    %18 = arith.mulf %16, %17 : vector<8x32xf32>
    %19 = vector.extract_strided_slice %18 {offsets = [0, 0], sizes = [8, 8], strides = [1, 1]} : vector<8x32xf32> to vector<8x8xf32>
    %20 = arith.truncf %19 : vector<8x8xf32> to vector<8x8xbf16>
    %c0_13 = arith.constant 0 : index
    %c0_14 = arith.constant 0 : index
    %c0_15 = arith.constant 0 : index
    %c0_16 = arith.constant 0 : index
    %21 = vector.load %arg4[%c0_13, %c0_14, %c0_15, %c0_16] : memref<1x4x8x8xbf16, #tpu.memory_space<vmem>>, vector<1x1x8x8xbf16>
    %22 = vector.shape_cast %21 : vector<1x1x8x8xbf16> to vector<8x8xbf16>
    %c0_17 = arith.constant 0 : index
    %c0_18 = arith.constant 0 : index
    %c0_19 = arith.constant 0 : index
    %c0_20 = arith.constant 0 : index
    %23 = vector.load %arg5[%c0_17, %c0_18, %c0_19, %c0_20] : memref<1x4x8x8xbf16, #tpu.memory_space<vmem>>, vector<1x1x8x8xbf16>
    %24 = vector.shape_cast %23 : vector<1x1x8x8xbf16> to vector<8x8xbf16>
    %cst_21 = arith.constant dense<0.000000e+00> : vector<8x8xf32>
    %25 = tpu.matmul %20, %22, %cst_21 {dimension_numbers = #tpu.dot_dimension_numbers<[1], [1], [0], [0], [0, 0, 1, 0], [], []>} : vector<8x8xbf16>, vector<8x8xbf16>, vector<8x8xf32> -> vector<8x8xf32>
    %26 = vector.broadcast %8 : vector<1x8xf32> to vector<8x8xf32>
    %27 = arith.addf %25, %26 : vector<8x8xf32>
    %cst_22 = arith.constant dense<0xFF800000> : vector<8xf32>
    %28 = vector.multi_reduction <maximumf>, %27, %cst_22 [1] : vector<8x8xf32> to vector<8xf32>
    %29 = vector.shape_cast %28 : vector<8xf32> to vector<8x1xf32>
    %30 = vector.broadcast %29 : vector<8x1xf32> to vector<8x8xf32>
    %31 = arith.subf %27, %30 : vector<8x8xf32>
    %32 = math.exp %31 : vector<8x8xf32>
    %cst_23 = arith.constant dense<0.000000e+00> : vector<8xf32>
    %33 = vector.multi_reduction <add>, %32, %cst_23 [1] : vector<8x8xf32> to vector<8xf32>
    %34 = vector.shape_cast %33 : vector<8xf32> to vector<8x1xf32>
    %35 = tpu.reciprocal %34 {approx = true} : vector<8x1xf32> -> vector<8x1xf32>
    %36 = vector.broadcast %35 : vector<8x1xf32> to vector<8x8xf32>
    %37 = arith.mulf %32, %36 : vector<8x8xf32>
    %38 = arith.truncf %37 : vector<8x8xf32> to vector<8x8xbf16>
    %cst_24 = arith.constant dense<0.000000e+00> : vector<8x8xf32>
    %39 = tpu.matmul %38, %24, %cst_24 {dimension_numbers = #tpu.dot_dimension_numbers<[1], [0], [0], [1], [0, 0, 1, 1], [], []>} : vector<8x8xbf16>, vector<8x8xbf16>, vector<8x8xf32> -> vector<8x8xf32>
    %40 = vector.extract_strided_slice %18 {offsets = [0, 8], sizes = [8, 8], strides = [1, 1]} : vector<8x32xf32> to vector<8x8xf32>
    %41 = arith.truncf %40 : vector<8x8xf32> to vector<8x8xbf16>
    %c0_25 = arith.constant 0 : index
    %c1 = arith.constant 1 : index
    %c0_26 = arith.constant 0 : index
    %c0_27 = arith.constant 0 : index
    %42 = vector.load %arg4[%c0_25, %c1, %c0_26, %c0_27] : memref<1x4x8x8xbf16, #tpu.memory_space<vmem>>, vector<1x1x8x8xbf16>
    %43 = vector.shape_cast %42 : vector<1x1x8x8xbf16> to vector<8x8xbf16>
    %c0_28 = arith.constant 0 : index
    %c1_29 = arith.constant 1 : index
    %c0_30 = arith.constant 0 : index
    %c0_31 = arith.constant 0 : index
    %44 = vector.load %arg5[%c0_28, %c1_29, %c0_30, %c0_31] : memref<1x4x8x8xbf16, #tpu.memory_space<vmem>>, vector<1x1x8x8xbf16>
    %45 = vector.shape_cast %44 : vector<1x1x8x8xbf16> to vector<8x8xbf16>
    %cst_32 = arith.constant dense<0.000000e+00> : vector<8x8xf32>
    %46 = tpu.matmul %41, %43, %cst_32 {dimension_numbers = #tpu.dot_dimension_numbers<[1], [1], [0], [0], [0, 0, 1, 0], [], []>} : vector<8x8xbf16>, vector<8x8xbf16>, vector<8x8xf32> -> vector<8x8xf32>
    %47 = vector.broadcast %8 : vector<1x8xf32> to vector<8x8xf32>
    %48 = arith.addf %46, %47 : vector<8x8xf32>
    %cst_33 = arith.constant dense<0xFF800000> : vector<8xf32>
    %49 = vector.multi_reduction <maximumf>, %48, %cst_33 [1] : vector<8x8xf32> to vector<8xf32>
    %50 = vector.shape_cast %49 : vector<8xf32> to vector<8x1xf32>
    %51 = vector.broadcast %50 : vector<8x1xf32> to vector<8x8xf32>
    %52 = arith.subf %48, %51 : vector<8x8xf32>
    %53 = math.exp %52 : vector<8x8xf32>
    %cst_34 = arith.constant dense<0.000000e+00> : vector<8xf32>
    %54 = vector.multi_reduction <add>, %53, %cst_34 [1] : vector<8x8xf32> to vector<8xf32>
    %55 = vector.shape_cast %54 : vector<8xf32> to vector<8x1xf32>
    %56 = tpu.reciprocal %55 {approx = true} : vector<8x1xf32> -> vector<8x1xf32>
    %57 = vector.broadcast %56 : vector<8x1xf32> to vector<8x8xf32>
    %58 = arith.mulf %53, %57 : vector<8x8xf32>
    %59 = arith.truncf %58 : vector<8x8xf32> to vector<8x8xbf16>
    %cst_35 = arith.constant dense<0.000000e+00> : vector<8x8xf32>
    %60 = tpu.matmul %59, %45, %cst_35 {dimension_numbers = #tpu.dot_dimension_numbers<[1], [0], [0], [1], [0, 0, 1, 1], [], []>} : vector<8x8xbf16>, vector<8x8xbf16>, vector<8x8xf32> -> vector<8x8xf32>
    %61 = vector.extract_strided_slice %18 {offsets = [0, 16], sizes = [8, 8], strides = [1, 1]} : vector<8x32xf32> to vector<8x8xf32>
    %62 = arith.truncf %61 : vector<8x8xf32> to vector<8x8xbf16>
    %c0_36 = arith.constant 0 : index
    %c2 = arith.constant 2 : index
    %c0_37 = arith.constant 0 : index
    %c0_38 = arith.constant 0 : index
    %63 = vector.load %arg4[%c0_36, %c2, %c0_37, %c0_38] : memref<1x4x8x8xbf16, #tpu.memory_space<vmem>>, vector<1x1x8x8xbf16>
    %64 = vector.shape_cast %63 : vector<1x1x8x8xbf16> to vector<8x8xbf16>
    %c0_39 = arith.constant 0 : index
    %c2_40 = arith.constant 2 : index
    %c0_41 = arith.constant 0 : index
    %c0_42 = arith.constant 0 : index
    %65 = vector.load %arg5[%c0_39, %c2_40, %c0_41, %c0_42] : memref<1x4x8x8xbf16, #tpu.memory_space<vmem>>, vector<1x1x8x8xbf16>
    %66 = vector.shape_cast %65 : vector<1x1x8x8xbf16> to vector<8x8xbf16>
    %cst_43 = arith.constant dense<0.000000e+00> : vector<8x8xf32>
    %67 = tpu.matmul %62, %64, %cst_43 {dimension_numbers = #tpu.dot_dimension_numbers<[1], [1], [0], [0], [0, 0, 1, 0], [], []>} : vector<8x8xbf16>, vector<8x8xbf16>, vector<8x8xf32> -> vector<8x8xf32>
    %68 = vector.broadcast %8 : vector<1x8xf32> to vector<8x8xf32>
    %69 = arith.addf %67, %68 : vector<8x8xf32>
    %cst_44 = arith.constant dense<0xFF800000> : vector<8xf32>
    %70 = vector.multi_reduction <maximumf>, %69, %cst_44 [1] : vector<8x8xf32> to vector<8xf32>
    %71 = vector.shape_cast %70 : vector<8xf32> to vector<8x1xf32>
    %72 = vector.broadcast %71 : vector<8x1xf32> to vector<8x8xf32>
    %73 = arith.subf %69, %72 : vector<8x8xf32>
    %74 = math.exp %73 : vector<8x8xf32>
    %cst_45 = arith.constant dense<0.000000e+00> : vector<8xf32>
    %75 = vector.multi_reduction <add>, %74, %cst_45 [1] : vector<8x8xf32> to vector<8xf32>
    %76 = vector.shape_cast %75 : vector<8xf32> to vector<8x1xf32>
    %77 = tpu.reciprocal %76 {approx = true} : vector<8x1xf32> -> vector<8x1xf32>
    %78 = vector.broadcast %77 : vector<8x1xf32> to vector<8x8xf32>
    %79 = arith.mulf %74, %78 : vector<8x8xf32>
    %80 = arith.truncf %79 : vector<8x8xf32> to vector<8x8xbf16>
    %cst_46 = arith.constant dense<0.000000e+00> : vector<8x8xf32>
    %81 = tpu.matmul %80, %66, %cst_46 {dimension_numbers = #tpu.dot_dimension_numbers<[1], [0], [0], [1], [0, 0, 1, 1], [], []>} : vector<8x8xbf16>, vector<8x8xbf16>, vector<8x8xf32> -> vector<8x8xf32>
    %82 = vector.extract_strided_slice %18 {offsets = [0, 24], sizes = [8, 8], strides = [1, 1]} : vector<8x32xf32> to vector<8x8xf32>
    %83 = arith.truncf %82 : vector<8x8xf32> to vector<8x8xbf16>
    %c0_47 = arith.constant 0 : index
    %c3 = arith.constant 3 : index
    %c0_48 = arith.constant 0 : index
    %c0_49 = arith.constant 0 : index
    %84 = vector.load %arg4[%c0_47, %c3, %c0_48, %c0_49] : memref<1x4x8x8xbf16, #tpu.memory_space<vmem>>, vector<1x1x8x8xbf16>
    %85 = vector.shape_cast %84 : vector<1x1x8x8xbf16> to vector<8x8xbf16>
    %c0_50 = arith.constant 0 : index
    %c3_51 = arith.constant 3 : index
    %c0_52 = arith.constant 0 : index
    %c0_53 = arith.constant 0 : index
    %86 = vector.load %arg5[%c0_50, %c3_51, %c0_52, %c0_53] : memref<1x4x8x8xbf16, #tpu.memory_space<vmem>>, vector<1x1x8x8xbf16>
    %87 = vector.shape_cast %86 : vector<1x1x8x8xbf16> to vector<8x8xbf16>
    %cst_54 = arith.constant dense<0.000000e+00> : vector<8x8xf32>
    %88 = tpu.matmul %83, %85, %cst_54 {dimension_numbers = #tpu.dot_dimension_numbers<[1], [1], [0], [0], [0, 0, 1, 0], [], []>} : vector<8x8xbf16>, vector<8x8xbf16>, vector<8x8xf32> -> vector<8x8xf32>
    %89 = vector.broadcast %8 : vector<1x8xf32> to vector<8x8xf32>
    %90 = arith.addf %88, %89 : vector<8x8xf32>
    %cst_55 = arith.constant dense<0xFF800000> : vector<8xf32>
    %91 = vector.multi_reduction <maximumf>, %90, %cst_55 [1] : vector<8x8xf32> to vector<8xf32>
    %92 = vector.shape_cast %91 : vector<8xf32> to vector<8x1xf32>
    %93 = vector.broadcast %92 : vector<8x1xf32> to vector<8x8xf32>
    %94 = arith.subf %90, %93 : vector<8x8xf32>
    %95 = math.exp %94 : vector<8x8xf32>
    %cst_56 = arith.constant dense<0.000000e+00> : vector<8xf32>
    %96 = vector.multi_reduction <add>, %95, %cst_56 [1] : vector<8x8xf32> to vector<8xf32>
    %97 = vector.shape_cast %96 : vector<8xf32> to vector<8x1xf32>
    %98 = tpu.reciprocal %97 {approx = true} : vector<8x1xf32> -> vector<8x1xf32>
    %99 = vector.broadcast %98 : vector<8x1xf32> to vector<8x8xf32>
    %100 = arith.mulf %95, %99 : vector<8x8xf32>
    %101 = arith.truncf %100 : vector<8x8xf32> to vector<8x8xbf16>
    %cst_57 = arith.constant dense<0.000000e+00> : vector<8x8xf32>
    %102 = tpu.matmul %101, %87, %cst_57 {dimension_numbers = #tpu.dot_dimension_numbers<[1], [0], [0], [1], [0, 0, 1, 1], [], []>} : vector<8x8xbf16>, vector<8x8xbf16>, vector<8x8xf32> -> vector<8x8xf32>
    %cst_58 = arith.constant 0.000000e+00 : f32
    %103 = vector.broadcast %cst_58 : f32 to vector<8x32xf32>
    %104 = arith.truncf %39 : vector<8x8xf32> to vector<8x8xbf16>
    %c0_59 = arith.constant 0 : index
    %c0_60 = arith.constant 0 : index
    %c0_61 = arith.constant 0 : index
    %105 = vector.load %arg8[%c0_59, %c0_60, %c0_61] : memref<4x8x32xbf16, #tpu.memory_space<vmem>>, vector<1x8x32xbf16>
    %106 = vector.shape_cast %105 : vector<1x8x32xbf16> to vector<8x32xbf16>
    %cst_62 = arith.constant dense<0.000000e+00> : vector<8x32xf32>
    %107 = tpu.matmul %104, %106, %cst_62 {dimension_numbers = #tpu.dot_dimension_numbers<[1], [0], [0], [1], [0, 0, 1, 1], [], []>} : vector<8x8xbf16>, vector<8x32xbf16>, vector<8x32xf32> -> vector<8x32xf32>
    %108 = arith.addf %103, %107 : vector<8x32xf32>
    %109 = arith.truncf %60 : vector<8x8xf32> to vector<8x8xbf16>
    %c1_63 = arith.constant 1 : index
    %c0_64 = arith.constant 0 : index
    %c0_65 = arith.constant 0 : index
    %110 = vector.load %arg8[%c1_63, %c0_64, %c0_65] : memref<4x8x32xbf16, #tpu.memory_space<vmem>>, vector<1x8x32xbf16>
    %111 = vector.shape_cast %110 : vector<1x8x32xbf16> to vector<8x32xbf16>
    %cst_66 = arith.constant dense<0.000000e+00> : vector<8x32xf32>
    %112 = tpu.matmul %109, %111, %cst_66 {dimension_numbers = #tpu.dot_dimension_numbers<[1], [0], [0], [1], [0, 0, 1, 1], [], []>} : vector<8x8xbf16>, vector<8x32xbf16>, vector<8x32xf32> -> vector<8x32xf32>
    %113 = arith.addf %108, %112 : vector<8x32xf32>
    %114 = arith.truncf %81 : vector<8x8xf32> to vector<8x8xbf16>
    %c2_67 = arith.constant 2 : index
    %c0_68 = arith.constant 0 : index
    %c0_69 = arith.constant 0 : index
    %115 = vector.load %arg8[%c2_67, %c0_68, %c0_69] : memref<4x8x32xbf16, #tpu.memory_space<vmem>>, vector<1x8x32xbf16>
    %116 = vector.shape_cast %115 : vector<1x8x32xbf16> to vector<8x32xbf16>
    %cst_70 = arith.constant dense<0.000000e+00> : vector<8x32xf32>
    %117 = tpu.matmul %114, %116, %cst_70 {dimension_numbers = #tpu.dot_dimension_numbers<[1], [0], [0], [1], [0, 0, 1, 1], [], []>} : vector<8x8xbf16>, vector<8x32xbf16>, vector<8x32xf32> -> vector<8x32xf32>
    %118 = arith.addf %113, %117 : vector<8x32xf32>
    %119 = arith.truncf %102 : vector<8x8xf32> to vector<8x8xbf16>
    %c3_71 = arith.constant 3 : index
    %c0_72 = arith.constant 0 : index
    %c0_73 = arith.constant 0 : index
    %120 = vector.load %arg8[%c3_71, %c0_72, %c0_73] : memref<4x8x32xbf16, #tpu.memory_space<vmem>>, vector<1x8x32xbf16>
    %121 = vector.shape_cast %120 : vector<1x8x32xbf16> to vector<8x32xbf16>
    %cst_74 = arith.constant dense<0.000000e+00> : vector<8x32xf32>
    %122 = tpu.matmul %119, %121, %cst_74 {dimension_numbers = #tpu.dot_dimension_numbers<[1], [0], [0], [1], [0, 0, 1, 1], [], []>} : vector<8x8xbf16>, vector<8x32xbf16>, vector<8x32xf32> -> vector<8x32xf32>
    %123 = arith.addf %118, %122 : vector<8x32xf32>
    %c0_75 = arith.constant 0 : index
    %c0_76 = arith.constant 0 : index
    %124 = vector.load %arg9[%c0_75, %c0_76] : memref<1x32xf32, #tpu.memory_space<vmem>>, vector<1x32xf32>
    %125 = vector.shape_cast %124 : vector<1x32xf32> to vector<32xf32>
    %126 = vector.shape_cast %125 : vector<32xf32> to vector<1x32xf32>
    %127 = vector.broadcast %126 : vector<1x32xf32> to vector<8x32xf32>
    %128 = arith.addf %123, %127 : vector<8x32xf32>
    %129 = arith.addf %1, %128 : vector<8x32xf32>
    %cst_77 = arith.constant dense<0.000000e+00> : vector<8xf32>
    %130 = vector.multi_reduction <add>, %129, %cst_77 [1] : vector<8x32xf32> to vector<8xf32>
    %131 = vector.shape_cast %130 : vector<8xf32> to vector<8x1xf32>
    %cst_78 = arith.constant 3.200000e+01 : f32
    %132 = vector.broadcast %cst_78 : f32 to vector<8x1xf32>
    %133 = arith.divf %131, %132 : vector<8x1xf32>
    %134 = vector.broadcast %133 : vector<8x1xf32> to vector<8x32xf32>
    %135 = arith.subf %129, %134 : vector<8x32xf32>
    %136 = arith.mulf %135, %135 : vector<8x32xf32>
    %cst_79 = arith.constant dense<0.000000e+00> : vector<8xf32>
    %137 = vector.multi_reduction <add>, %136, %cst_79 [1] : vector<8x32xf32> to vector<8xf32>
    %138 = vector.shape_cast %137 : vector<8xf32> to vector<8x1xf32>
    %cst_80 = arith.constant 3.200000e+01 : f32
    %139 = vector.broadcast %cst_80 : f32 to vector<8x1xf32>
    %140 = arith.divf %138, %139 : vector<8x1xf32>
    %141 = vector.broadcast %133 : vector<8x1xf32> to vector<8x32xf32>
    %142 = arith.subf %129, %141 : vector<8x32xf32>
    %cst_81 = arith.constant 9.99999974E-6 : f32
    %143 = vector.broadcast %cst_81 : f32 to vector<8x1xf32>
    %144 = arith.addf %140, %143 : vector<8x1xf32>
    %145 = math.rsqrt %144 : vector<8x1xf32>
    %146 = vector.broadcast %145 : vector<8x1xf32> to vector<8x32xf32>
    %147 = arith.mulf %142, %146 : vector<8x32xf32>
    %c0_82 = arith.constant 0 : index
    %c0_83 = arith.constant 0 : index
    %148 = vector.load %arg10[%c0_82, %c0_83] : memref<1x32xf32, #tpu.memory_space<vmem>>, vector<1x32xf32>
    %149 = vector.shape_cast %148 : vector<1x32xf32> to vector<32xf32>
    %150 = vector.shape_cast %149 : vector<32xf32> to vector<1x32xf32>
    %151 = vector.broadcast %150 : vector<1x32xf32> to vector<8x32xf32>
    %152 = arith.mulf %147, %151 : vector<8x32xf32>
    %c0_84 = arith.constant 0 : index
    %c0_85 = arith.constant 0 : index
    %153 = vector.load %arg11[%c0_84, %c0_85] : memref<1x32xf32, #tpu.memory_space<vmem>>, vector<1x32xf32>
    %154 = vector.shape_cast %153 : vector<1x32xf32> to vector<32xf32>
    %155 = vector.shape_cast %154 : vector<32xf32> to vector<1x32xf32>
    %156 = vector.broadcast %155 : vector<1x32xf32> to vector<8x32xf32>
    %157 = arith.addf %152, %156 : vector<8x32xf32>
    %158 = arith.truncf %157 : vector<8x32xf32> to vector<8x32xbf16>
    %c0_86 = arith.constant 0 : index
    %c0_87 = arith.constant 0 : index
    %159 = vector.load %arg12[%c0_86, %c0_87] : memref<32x128xbf16, #tpu.memory_space<vmem>>, vector<32x128xbf16>
    %cst_88 = arith.constant dense<0.000000e+00> : vector<8x128xf32>
    %160 = tpu.matmul %158, %159, %cst_88 {dimension_numbers = #tpu.dot_dimension_numbers<[1], [0], [0], [1], [0, 0, 1, 1], [], []>} : vector<8x32xbf16>, vector<32x128xbf16>, vector<8x128xf32> -> vector<8x128xf32>
    %c0_89 = arith.constant 0 : index
    %c0_90 = arith.constant 0 : index
    %161 = vector.load %arg13[%c0_89, %c0_90] : memref<1x128xf32, #tpu.memory_space<vmem>>, vector<1x128xf32>
    %162 = vector.shape_cast %161 : vector<1x128xf32> to vector<128xf32>
    %163 = vector.shape_cast %162 : vector<128xf32> to vector<1x128xf32>
    %164 = vector.broadcast %163 : vector<1x128xf32> to vector<8x128xf32>
    %165 = arith.addf %160, %164 : vector<8x128xf32>
    %cst_91 = arith.constant 0.000000e+00 : f32
    %166 = vector.broadcast %cst_91 : f32 to vector<8x128xf32>
    %167 = arith.maximumf %165, %166 : vector<8x128xf32>
    %168 = arith.truncf %167 : vector<8x128xf32> to vector<8x128xbf16>
    %c0_92 = arith.constant 0 : index
    %c0_93 = arith.constant 0 : index
    %169 = vector.load %arg14[%c0_92, %c0_93] : memref<128x32xbf16, #tpu.memory_space<vmem>>, vector<128x32xbf16>
    %cst_94 = arith.constant dense<0.000000e+00> : vector<8x32xf32>
    %170 = tpu.matmul %168, %169, %cst_94 {dimension_numbers = #tpu.dot_dimension_numbers<[1], [0], [0], [1], [0, 0, 1, 1], [], []>} : vector<8x128xbf16>, vector<128x32xbf16>, vector<8x32xf32> -> vector<8x32xf32>
    %c0_95 = arith.constant 0 : index
    %c0_96 = arith.constant 0 : index
    %171 = vector.load %arg15[%c0_95, %c0_96] : memref<1x32xf32, #tpu.memory_space<vmem>>, vector<1x32xf32>
    %172 = vector.shape_cast %171 : vector<1x32xf32> to vector<32xf32>
    %173 = vector.shape_cast %172 : vector<32xf32> to vector<1x32xf32>
    %174 = vector.broadcast %173 : vector<1x32xf32> to vector<8x32xf32>
    %175 = arith.addf %170, %174 : vector<8x32xf32>
    %176 = arith.addf %157, %175 : vector<8x32xf32>
    %cst_97 = arith.constant dense<0.000000e+00> : vector<8xf32>
    %177 = vector.multi_reduction <add>, %176, %cst_97 [1] : vector<8x32xf32> to vector<8xf32>
    %178 = vector.shape_cast %177 : vector<8xf32> to vector<8x1xf32>
    %cst_98 = arith.constant 3.200000e+01 : f32
    %179 = vector.broadcast %cst_98 : f32 to vector<8x1xf32>
    %180 = arith.divf %178, %179 : vector<8x1xf32>
    %181 = vector.broadcast %180 : vector<8x1xf32> to vector<8x32xf32>
    %182 = arith.subf %176, %181 : vector<8x32xf32>
    %183 = arith.mulf %182, %182 : vector<8x32xf32>
    %cst_99 = arith.constant dense<0.000000e+00> : vector<8xf32>
    %184 = vector.multi_reduction <add>, %183, %cst_99 [1] : vector<8x32xf32> to vector<8xf32>
    %185 = vector.shape_cast %184 : vector<8xf32> to vector<8x1xf32>
    %cst_100 = arith.constant 3.200000e+01 : f32
    %186 = vector.broadcast %cst_100 : f32 to vector<8x1xf32>
    %187 = arith.divf %185, %186 : vector<8x1xf32>
    %188 = vector.broadcast %180 : vector<8x1xf32> to vector<8x32xf32>
    %189 = arith.subf %176, %188 : vector<8x32xf32>
    %cst_101 = arith.constant 9.99999974E-6 : f32
    %190 = vector.broadcast %cst_101 : f32 to vector<8x1xf32>
    %191 = arith.addf %187, %190 : vector<8x1xf32>
    %192 = math.rsqrt %191 : vector<8x1xf32>
    %193 = vector.broadcast %192 : vector<8x1xf32> to vector<8x32xf32>
    %194 = arith.mulf %189, %193 : vector<8x32xf32>
    %c0_102 = arith.constant 0 : index
    %c0_103 = arith.constant 0 : index
    %195 = vector.load %arg16[%c0_102, %c0_103] : memref<1x32xf32, #tpu.memory_space<vmem>>, vector<1x32xf32>
    %196 = vector.shape_cast %195 : vector<1x32xf32> to vector<32xf32>
    %197 = vector.shape_cast %196 : vector<32xf32> to vector<1x32xf32>
    %198 = vector.broadcast %197 : vector<1x32xf32> to vector<8x32xf32>
    %199 = arith.mulf %194, %198 : vector<8x32xf32>
    %c0_104 = arith.constant 0 : index
    %c0_105 = arith.constant 0 : index
    %200 = vector.load %arg17[%c0_104, %c0_105] : memref<1x32xf32, #tpu.memory_space<vmem>>, vector<1x32xf32>
    %201 = vector.shape_cast %200 : vector<1x32xf32> to vector<32xf32>
    %202 = vector.shape_cast %201 : vector<32xf32> to vector<1x32xf32>
    %203 = vector.broadcast %202 : vector<1x32xf32> to vector<8x32xf32>
    %204 = arith.addf %199, %203 : vector<8x32xf32>
    %c0_106 = arith.constant 0 : index
    %c0_107 = arith.constant 0 : index
    %c0_108 = arith.constant 0 : index
    %205 = vector.load %arg18[%c0_106, %c0_107, %c0_108] : memref<1x8x32xf32, #tpu.memory_space<vmem>>, vector<1x8x32xf32>
    %206 = vector.shape_cast %205 : vector<1x8x32xf32> to vector<8x32xf32>
    %207 = vector.shape_cast %204 : vector<8x32xf32> to vector<1x8x32xf32>
    tpu.vector_store %arg18[%c0_106, %c0_107, %c0_108], %207 {strides = array<i32>} : memref<1x8x32xf32, #tpu.memory_space<vmem>>, vector<1x8x32xf32>,
    return
  }
  func.func @transform_0(%arg0: i32, %arg1: i32) -> (i32, i32, i32) {
    %c0_i32 = arith.constant 0 : i32
    %c0_i32_0 = arith.constant 0 : i32
    return %arg0, %arg1, %c0_i32 : i32, i32, i32
  }
  func.func @transform_1(%arg0: i32, %arg1: i32) -> (i32, i32, i32) {
    %c0_i32 = arith.constant 0 : i32
    %c0_i32_0 = arith.constant 0 : i32
    %c0_i32_1 = arith.constant 0 : i32
    return %arg0, %c0_i32, %c0_i32_0 : i32, i32, i32
  }
  func.func @transform_2(%arg0: i32, %arg1: i32) -> (i32, i32, i32, i32) {
    %c0_i32 = arith.constant 0 : i32
    %c0_i32_0 = arith.constant 0 : i32
    %c0_i32_1 = arith.constant 0 : i32
    %c0_i32_2 = arith.constant 0 : i32
    return %arg0, %c0_i32, %c0_i32_0, %c0_i32_1 : i32, i32, i32, i32
  }
  func.func @transform_3(%arg0: i32, %arg1: i32) -> (i32, i32, i32, i32) {
    %c0_i32 = arith.constant 0 : i32
    %c0_i32_0 = arith.constant 0 : i32
    %c0_i32_1 = arith.constant 0 : i32
    %c0_i32_2 = arith.constant 0 : i32
    return %arg0, %c0_i32, %c0_i32_0, %c0_i32_1 : i32, i32, i32, i32
  }
  func.func @transform_4(%arg0: i32, %arg1: i32) -> (i32, i32) {
    %c0_i32 = arith.constant 0 : i32
    %c0_i32_0 = arith.constant 0 : i32
    %c0_i32_1 = arith.constant 0 : i32
    return %c0_i32, %c0_i32_0 : i32, i32
  }
  func.func @transform_5(%arg0: i32, %arg1: i32) -> (i32, i32) {
    %c0_i32 = arith.constant 0 : i32
    %c0_i32_0 = arith.constant 0 : i32
    %c0_i32_1 = arith.constant 0 : i32
    return %c0_i32, %c0_i32_0 : i32, i32
  }
  func.func @transform_6(%arg0: i32, %arg1: i32) -> (i32, i32, i32) {
    %c0_i32 = arith.constant 0 : i32
    %c0_i32_0 = arith.constant 0 : i32
    %c0_i32_1 = arith.constant 0 : i32
    %c0_i32_2 = arith.constant 0 : i32
    return %c0_i32, %c0_i32_0, %c0_i32_1 : i32, i32, i32
  }
  func.func @transform_7(%arg0: i32, %arg1: i32) -> (i32, i32) {
    %c0_i32 = arith.constant 0 : i32
    %c0_i32_0 = arith.constant 0 : i32
    %c0_i32_1 = arith.constant 0 : i32
    return %c0_i32, %c0_i32_0 : i32, i32
  }
  func.func @transform_8(%arg0: i32, %arg1: i32) -> (i32, i32) {
    %c0_i32 = arith.constant 0 : i32
    %c0_i32_0 = arith.constant 0 : i32
    %c0_i32_1 = arith.constant 0 : i32
    return %c0_i32, %c0_i32_0 : i32, i32
  }
  func.func @transform_9(%arg0: i32, %arg1: i32) -> (i32, i32) {
    %c0_i32 = arith.constant 0 : i32
    %c0_i32_0 = arith.constant 0 : i32
    %c0_i32_1 = arith.constant 0 : i32
    return %c0_i32, %c0_i32_0 : i32, i32
  }
  func.func @transform_10(%arg0: i32, %arg1: i32) -> (i32, i32) {
    %c0_i32 = arith.constant 0 : i32
    %c0_i32_0 = arith.constant 0 : i32
    %c0_i32_1 = arith.constant 0 : i32
    return %c0_i32, %c0_i32_0 : i32, i32
  }
  func.func @transform_11(%arg0: i32, %arg1: i32) -> (i32, i32) {
    %c0_i32 = arith.constant 0 : i32
    %c0_i32_0 = arith.constant 0 : i32
    %c0_i32_1 = arith.constant 0 : i32
    return %c0_i32, %c0_i32_0 : i32, i32
  }
  func.func @transform_12(%arg0: i32, %arg1: i32) -> (i32, i32) {
    %c0_i32 = arith.constant 0 : i32
    %c0_i32_0 = arith.constant 0 : i32
    %c0_i32_1 = arith.constant 0 : i32
    return %c0_i32, %c0_i32_0 : i32, i32
  }
  func.func @transform_13(%arg0: i32, %arg1: i32) -> (i32, i32) {
    %c0_i32 = arith.constant 0 : i32
    %c0_i32_0 = arith.constant 0 : i32
    %c0_i32_1 = arith.constant 0 : i32
    return %c0_i32, %c0_i32_0 : i32, i32
  }
  func.func @transform_14(%arg0: i32, %arg1: i32) -> (i32, i32) {
    %c0_i32 = arith.constant 0 : i32
    %c0_i32_0 = arith.constant 0 : i32
    %c0_i32_1 = arith.constant 0 : i32
    return %c0_i32, %c0_i32_0 : i32, i32
  }
  func.func @transform_15(%arg0: i32, %arg1: i32) -> (i32, i32) {
    %c0_i32 = arith.constant 0 : i32
    %c0_i32_0 = arith.constant 0 : i32
    %c0_i32_1 = arith.constant 0 : i32
    return %c0_i32, %c0_i32_0 : i32, i32
  }
  func.func @transform_16(%arg0: i32, %arg1: i32) -> (i32, i32, i32) {
    %c0_i32 = arith.constant 0 : i32
    %c0_i32_0 = arith.constant 0 : i32
    return %arg0, %arg1, %c0_i32 : i32, i32, i32
  }
}

</mosaic_0001>

<bundles_post_ra>
// kernel: transformer_block.1
= control target key start
LH: loop header
LB: loop body
LE: loop exit
PB: predicated region body
PF: predicated region fallthrough
CT: control target
= control target key end

     0   :  { %s1879_s0 = inlined_call_operand.vmem [shape: f32[2,8,32], index: 0, kind: input, shape index: {}]   ;;  %s1880_s1 = inlined_call_operand.vmem [shape: f32[2,1,8], index: 1, kind: input, shape index: {}]   ;;  %s1881_s2 = inlined_call_operand.vmem [shape: bf16[2,4,8,8], index: 2, kind: input, shape index: {}]   ;;  %s1882_s3 = inlined_call_operand.vmem [shape: bf16[2,4,8,8], index: 3, kind: input, shape index: {}]   ;;  %s1883_s4 = inlined_call_operand.vmem [shape: bf16[32,32], index: 4, kind: input, shape index: {}]   ;;  %s1884_s5 = inlined_call_operand.vmem [shape: f32[1,32], index: 5, kind: input, shape index: {}]   ;;  %s1885_s6 = inlined_call_operand.vmem [shape: bf16[4,8,32], index: 6, kind: input, shape index: {}]   ;;  %s1886_s7 = inlined_call_operand.vmem [shape: f32[1,32], index: 7, kind: input, shape index: {}]   ;;  %s1887_s8 = inlined_call_operand.vmem [shape: f32[1,32], index: 8, kind: input, shape index: {}]   ;;  %s1888_s9 = inlined_call_operand.vmem [shape: f32[1,32], index: 9, kind: input, shape index: {}]   ;;  %s1889_s10 = inlined_call_operand.vmem [shape: bf16[32,128], index: 10, kind: input, shape index: {}]   ;;  %s1890_s11 = inlined_call_operand.vmem [shape: f32[1,128], index: 11, kind: input, shape index: {}]   ;;  %s1891_s12 = inlined_call_operand.vmem [shape: bf16[128,32], index: 12, kind: input, shape index: {}]   ;;  %s1892_s13 = inlined_call_operand.vmem [shape: f32[1,32], index: 13, kind: input, shape index: {}]   ;;  %s1893_s14 = inlined_call_operand.vmem [shape: f32[1,32], index: 14, kind: input, shape index: {}]   ;;  %s1894_s15 = inlined_call_operand.vmem [shape: f32[1,32], index: 15, kind: input, shape index: {}]   ;;  %s1895_s16 = inlined_call_operand.hbm [shape: f32[2,8,32], index: 16, kind: output, shape index: {}]  }
   0x1   :  { %1900 = sst [smem:[#allocation10_spill]] %s1879_s0 }
   0x2   :  { %1901 = sst [smem:[#allocation11_spill]] %s1880_s1 }
   0x3   :  { %1902 = sst [smem:[#allocation12_spill]] %s1881_s2 }
   0x4   :  { %21 = vsyncpa [#allocation3], 0 }
   0x5   :  { %23 = vsyncpa [#allocation3 + $0x1], 0  ;;  %s1636_s21 = smov 0   ;;  %s1638_s22 = smov 0  }
   0x6   :  { %s1640_s23 = smov 0   ;;  %s1642_s24 = smov 0  }
   0x7   :  { %s1644_s25 = smov 0   ;;  %s1646_s26 = smov 0  }
   0x8 LB: > { %1903 = sst [smem:[#allocation5_spill]] %s1532_s23  ;;  %s1276_s27 = sadd.s32 4294967295, %s1544_s26   ;;  %s1544_s26 = sphi %s1646_s26, %s29_s26   ;;  %s1540_s25 = sphi %s1644_s25, %s1917_s25   ;;  %s1536_s24 = sphi %s1642_s24, %s1916_s24   ;;  %s1532_s23 = sphi %s1640_s23, %s1915_s23   ;;  %s1528_s22 = sphi %s1638_s22, %s1919_s22   ;;  %s1524_s21 = sphi %s1636_s21, %s1918_s21  }
   0x9   : > { %1904 = sst [smem:[#allocation6_spill]] %s1540_s25  ;;  %s1277_s28 = sadd.s32 4294967294, %s1544_s26  }
   0xa   : > { %s41_s29 = sadd.s32 1, %s1540_s25  ;;  %s408_s30 = sadd.s32 1, %s1532_s23 }
   0xb   : > { %p43_p0 = scmp.ge.s32.totalorder %s41_s29, 2  ;;  %p418_p1 = scmp.ne.s32.totalorder %s1532_s23, %s1528_s22 }
   0xc   : > { %p419_p2 = scmp.eq.s32.totalorder %s1276_s27, 1  ;;  %p424_p3 = scmp.ne.s32.totalorder %s1528_s22, %s1524_s21 }
   0xd   : > { %s1921_s29 = smov (%p43_p0, %s41_s29), 0  ;;  %p425_p5 = scmp.eq.s32.totalorder %s1277_s28, 1 }
   0xe   : > { %1905 = sst [smem:[#allocation7_spill]] %s1921_s29  ;;  %p1676_p4 = por %p419_p2, %p418_p1 }
   0xf   : > { %s403_s17 = ssub.s32 %s1540_s25, %s1921_s29  ;;  %p1280_p6 = scmp.ge.s32.totalorder %s1544_s26, 1 }
  0x10   : > { %p406_p7 = scmp.eq.s32.totalorder %s403_s17, 0  ;;  %p1683_p8 = por %p425_p5, %p424_p3 }
  0x11   : > { %p511_p9 = scmp.lt.s32.totalorder %s1544_s26, 3 }
  0x12   : > { %s1907_s18 = scalar_select %p1683_p8, 1, 0 }
  0x13   : > { %s1689_s19 = scalar_select %p406_p7, %s1532_s23, %s408_s30  }
  0x14   : > { %1908 = sst [smem:[#allocation8_spill]] %s1907_s18  ;;  %p512_p10 = pnand %p1280_p6, %p511_p9 }
  0x15   : > { %1909 = sst [smem:[#allocation9_spill]] %s1689_s19  ;;  %p576_p11 = scmp.lt.s32.totalorder (!%p512_p10), %s1536_s24, 1 }
  0x16   : > { %515 = sbr.rel (%p512_p10) target bundleno = 1767 (0x6e7), region = 84  ;;  %s1910_s23 = sld [smem:[#allocation10_spill]] (!%p512_p10) }
  0x17   : > { %s1911_s2 = sld [smem:[#allocation12_spill]] (!%p512_p10)  ;;  %s1547_s19 = smov (!%p512_p10), 120  }
  0x18   : > { %s1912_s1 = sld [smem:[#allocation11_spill]] (!%p512_p10)  ;;  %s573_s25 = sand.u32 (!%p512_p10), 1, %s1528_s22  }
  0x1b   : > { %v1365_v0 = vld [vmem:[%s1883_s4 + $0x8] sm:$0xff]  ;;  %v1364_v1 = vld [vmem:[%s1883_s4] sm:$0xff]  ;;  %s1699_s17 = scalar_select %p576_p11, %s1536_s24, 1  ;;  %vm622_vm0 = vcmask 261120   ;;  %vm646_vm1 = vcmask 64512   ;;  %vm681_vm3 = vcmask 1043456  }
  0x1c   : > { %632 = vmatpush.bf16.msra.mxu0 %v1365_v0  ;;  %v1436_v10 = vld [vmem:[%s1884_s5] ss:$0 sm:$0xff]  ;;  %v1549_v21 = vmov -1e+10  }
  0x1d   : > { %s1282_s30 = sshll.u32 %s1699_s17, 3  ;;  %s1362_s29 = sshll.u32 %s1699_s17, 4 }
  0x1e   : > { %s582_s18 = scalar_lea.vmem %s1910_s23, %s1282_s30  ;;  %s590_s28 = scalar_lea.vmem %s1911_s2, %s1362_s29 }
  0x1f   : > { %v1705_v2 = vld [vmem:[%s582_s18] sm:$0xff]  ;;  %v1302_v7 = vld [vmem:[%s590_s28 + $0x8] sm:$0xf]  ;;  %s1546_s18 = smov 112   ;;  %s1548_s30 = smov 104  }
  0x20   : > { %633 = vmatpush.bf16.msra.mxu0 %v1364_v1  ;;  %v601_v3 = vpack.c.bf16 %v1705_v2, %v1705_v2  ;;  %v641_v4 = vld [vmem:[%s590_s28] sm:$0xf]  ;;  %v1298_v6 = vld [vmem:[%s590_s28 + $0x4] sm:$0xf]  ;;  %v765_v9 = vsel %vm646_vm1, %v1302_v7, 0  ;;  %s585_s23 = scalar_lea.vmem %s1912_s1, %s1699_s17  ;;  %s1359_s17 = sshll.u32 %s1536_s24, 3 }
  0x21   : > { %v651_v5 = vsel %vm646_vm1, %v641_v4, 0  ;;  %v709_v8 = vsel %vm646_vm1, %v1298_v6, 0  ;;  %v1306_v16 = vld [vmem:[%s590_s28 + $0xc] sm:$0xf]  ;;  %v598_v20 = vld [vmem:[%s585_s23] sm:$0x1]  ;;  %s1167_s27 = scalar_lea.hbm %s1895_s16, %s1359_s17 }
  0x22   : > { %660 = vmatpush.bf16.xpose.msra.mxu3 %v651_v5  ;;  %v821_v17 = vsel %vm646_vm1, %v1306_v16, 0  ;;  %vm599_vm2 = vcmp.gt.f32.partialorder %v598_v20, 0.0  ;;  %s1171_s2 = sshll.u32 %s1167_s27, 4  ;;  %s1172_s2 = int_to_ptr.hbm [resolvable:$true] %s1171_s2 }
  0x23   : > { %1295 = vmatmul.msk.bf16.vlgmr.msra.gmra.mxu0 %vm622_vm0, %v601_v3  ;;  %v600_v22 = vsel %vm599_vm2, 0.0, %v1549_v21 }
  0x24   : > { %774 = vmatpush.bf16.xpose.msrb.mxu0 %v765_v9  ;;  %v644_v23 = vperm.slane %v600_v22, 0 }
  0x2a   : > { %718 = vmatpush.bf16.xpose.msrb.mxu3 %v709_v8 }
  0xa0   : > { %v635_v11 = vpop.f32.mrf.mxu0 }
  0xa1   : > { %v636_v12 = vadd.f32 %v1436_v10, %v635_v11 }
  0xa3   : > { %v639_v13 = vmul.f32 0.35355338, %v636_v12 }
  0xa5   : > { %v640_v14 = vpack.c.bf16 %v639_v13, %v639_v13 }
  0xa7   : > { %759 = vrot.lane.b32.xlu1 %v640_v14, %s1546_s18  ;;  %703 = vrot.lane.b32.xlu0 %v640_v14, %s1547_s19  ;;  %s1741_s18 = scalar_lea.vmem %s1882_s3, %s1362_s29  ;;  %s1156_s29 = scalar_lea.sflag [#allocation3], %s573_s25 }
  0xa8   : > { %1296 = vmatmul.msk.bf16.vlgmr.msra.gmra.mxu3 %vm646_vm1, %v640_v14  ;;  %v637_v15 = vpop.f32.mrf.mxu0  ;;  %v642_v46 = vld [vmem:[%s1741_s18] sm:$0xf]  ;;  %v1299_v51 = vld [vmem:[%s1741_s18 + $0x4] sm:$0xf]  ;;  %v1307_v6 = vld [vmem:[%s1741_s18 + $0xc] sm:$0xf] }
  0xa9   : > { %830 = vmatpush.bf16.xpose.msra.mxu3 %v821_v17  ;;  %v683_v47 = vsel %vm681_vm3, %v642_v46, 0  ;;  %v740_v52 = vsel %vm681_vm3, %v1299_v51, 0  ;;  %v852_v7 = vsel %vm681_vm3, %v1307_v6, 0  ;;  %v1303_v8 = vld [vmem:[%s1741_s18 + $0x8] sm:$0xf]  ;;  %v1366_v6 = vld [vmem:[%s1889_s10] sm:$0xff] }
  0xaa   : > { %692 = vmatpush.bf16.msra.mxu2 %v683_v47  ;;  %v796_v9 = vsel %vm681_vm3, %v1303_v8, 0  ;;  %s1281_s18 = sshll.u32 %s573_s25, 3  ;;  %s1480_s19 = sshra.s32 %s1172_s2, 4  ;;  %s1481_s19 = int_to_ptr.hbm [resolvable:$true] %s1480_s19 }
  0xab   : > { %805 = vmatpush.bf16.msra.mxu1 %v796_v9  ;;  %s575_s1 = scalar_lea.vmem [#allocation2], %s1281_s18  ;;  %s1482_s17 = scalar_lea.hbm %s1481_s19, 8 }
  0xac   : > { %s1169_s24 = sshll.u32 %s575_s1, 4  ;;  %p1483_p12 = scmp.ne.s32.totalorder %s1481_s19, %s1482_s17  ;;  %s1170_s24 = int_to_ptr.vmem [resolvable:$true] %s1169_s24 }
  0xad   : > { %s1486_s18 = scalar_lea.hbm %s1895_s16, 16  ;;  %p1487_p1 = scmp.lt.s32.totalorder %s1481_s19, %s1895_s16 }
  0xae   : > { %749 = vmatpush.bf16.msrb.mxu2 %v740_v52  ;;  %p1484_p13 = pnand %p1483_p12, %p1676_p4  ;;  %p1488_p2 = scmp.lt.s32.totalorder %s1486_s18, %s1482_s17 }
  0xaf   : > { %815 = vrot.lane.b32.xlu0 %v640_v14, %s1548_s30  ;;  %v868_v14 = vld [vmem:[%s1885_s6] sm:$0xf] }
  0xb0   : > { %v895_v16 = vsel %vm681_vm3, %v868_v14, 0  ;;  %p1485_p0 = pneg %p1484_p13  ;;  %p1489_p3 = por %p1488_p2, %p1487_p1 }
  0xb1   : > { %904 = vmatpush.bf16.msrb.mxu1 %v895_v16  ;;  %v1371_v16 = vld [vmem:[%s1891_s12 + $0x18] sm:$0xff] }
  0xb2   : > { %p1490_p5 = pnand %p1489_p3, %p1485_p0 }
 0x119   : > { %v760_v18 = vpop.permute.xlu1 %759  ;;  %v704_v19 = vpop.permute.xlu0 %703 }
 0x11a   : > { %1300 = vmatmul.msk.bf16.vlgmr.msrb.gmra.mxu3 %vm646_vm1, %v704_v19  ;;  %1304 = vmatmul.msk.bf16.vlgmr.msrb.gmra.mxu0 %vm646_vm1, %v760_v18 }
 0x121   : > { %v816_v24 = vpop.permute.xlu0 %815 }
 0x12a   : > { %1308 = vmatmul.msk.bf16.vlgmr.msra.gmra.mxu3 %vm646_vm1, %v816_v24 }
 0x12b   : > { %v662_v25 = vpop.f32.mrf.mxu3 }
 0x12c   : > { %v663_v26 = vadd.f32 %v662_v25, %v644_v23 }
 0x12e   : > { %v666_v27 = vsel %vm646_vm1, %v663_v26, -inf }
 0x12f   : > { %667 = vmax.xlane.f32.xlu1 %v666_v27  ;;  %v1310_v27 = vld [vmem:[%s1885_s6 + $0x4] sm:$0xf] }
 0x133   : > { %v664_v28 = vpop.f32.mrf.mxu3 }
 0x134   : > { %v876_v28 = vsel %vm681_vm3, %v1310_v27, 0 }
 0x135   : > { %885 = vmatpush.bf16.msra.mxu0 %v876_v28 }
 0x197   : > { %v776_v29 = vpop.f32.mrf.mxu0 }
 0x198   : > { %v777_v30 = vadd.f32 %v776_v29, %v644_v23  ;;  %v1313_v29 = vld [vmem:[%s1885_s6 + $0x8] sm:$0xf] }
 0x19a   : > { %v780_v31 = vsel %vm646_vm1, %v777_v30, -inf }
 0x19b   : > { %781 = vmax.xlane.f32.xlu0 %v780_v31  ;;  %v917_v31 = vsel %vm681_vm3, %v1313_v29, 0  ;;  %v1369_v29 = vld [vmem:[%s1891_s12 + $0x8] sm:$0xff] }
 0x19c   : > { %926 = vmatpush.bf16.msrb.mxu3 %v917_v31  ;;  %v1440_v31 = vld [vmem:[%s1890_s11] ss:$0 sm:$0xff] }
 0x19d   : > { %v720_v32 = vpop.f32.mrf.mxu3 }
 0x19e   : > { %v721_v33 = vadd.f32 %v720_v32, %v644_v23 }
 0x19f   : > { %v778_v34 = vpop.f32.mrf.mxu0 }
 0x1a0   : > { %v724_v35 = vsel %vm646_vm1, %v721_v33, -inf }
 0x1a1   : > { %725 = vmax.xlane.f32.xlu2 %v724_v35 }
 0x1a2   : > { %v668_v36 = vpop.xlane.xlu1 %667 }
 0x1a3   : > { %v669_v38 = vsub.f32 %v663_v26, %v668_v36 }
 0x1a5   : > { %v722_v37 = vpop.f32.mrf.mxu3  ;;  %v670_v39 = vmul.f32 1.442695, %v669_v38 }
 0x1a7   : > { %1444 = vpow2.f32 %v670_v39 }
 0x1ad   : > { %v832_v40 = vpop.f32.mrf.mxu3  ;;  %v1445_v43 = vpop.eup %1444 }
 0x1ae   : > { %v833_v41 = vadd.f32 %v832_v40, %v644_v23  ;;  %v672_v45 = vsel %vm646_vm1, %v1445_v43, 0.0 }
 0x1b0   : > { %v836_v42 = vsel %vm646_vm1, %v833_v41, -inf }
 0x1b1   : > { %837 = vmax.xlane.f32.xlu2 %v836_v42 }
 0x1b5   : > { %v834_v44 = vpop.f32.mrf.mxu3 }
 0x1b9   : > { %673 = vadd.xlane.f32.xlu2 %v672_v45 }
 0x20e   : > { %v782_v55 = vpop.xlane.xlu0 %781 }
 0x20f   : > { %v783_v58 = vsub.f32 %v777_v30, %v782_v55  ;;  %v1315_v30 = vld [vmem:[%s1885_s6 + $0xc] sm:$0xf] }
 0x210   : > { %v940_v32 = vsel %vm681_vm3, %v1315_v30, 0  ;;  %v1368_v30 = vld [vmem:[%s1891_s12] sm:$0xff] }
 0x211   : > { %v784_v60 = vmul.f32 1.442695, %v783_v58 }
 0x214   : > { %v726_v48 = vpop.xlane.xlu2 %725 }
 0x215   : > { %v727_v49 = vsub.f32 %v721_v33, %v726_v48 }
 0x217   : > { %v728_v50 = vmul.f32 1.442695, %v727_v49 }
 0x219   : > { %1446 = vpow2.f32 %v728_v50  ;;  %v1437_v50 = vld [vmem:[%s1886_s7] ss:$0 sm:$0xff] }
 0x21f   : > { %v1447_v53 = vpop.eup %1446 }
 0x220   : > { %v730_v54 = vsel %vm646_vm1, %v1447_v53, 0.0 }
 0x221   : > { %731 = vadd.xlane.f32.xlu2 %v730_v54 }
 0x224   : > { %v838_v56 = vpop.xlane.xlu2 %837 }
 0x225   : > { %v839_v57 = vsub.f32 %v833_v41, %v838_v56 }
 0x227   : > { %v840_v59 = vmul.f32 1.442695, %v839_v57  ;;  %v1550_v57 = vmov 32.0  }
 0x229   : > { %1448 = vpow2.f32 %v840_v59 }
 0x22c   : > { %v674_v61 = vpop.xlane.xlu2 %673 }
 0x22d   : > { %1450 = vrcp.f32 %v674_v61 }
 0x22e   : > { %1452 = vpow2.f32 %v784_v60 }
 0x22f   : > { %v1449_v62 = vpop.eup %1448 }
 0x230   : > { %v842_v63 = vsel %vm646_vm1, %v1449_v62, 0.0 }
 0x231   : > { %843 = vadd.xlane.f32.xlu2 %v842_v63 }
 0x233   : > { %v1451_v0 = vpop.eup %1450 }
 0x234   : > { %v676_v1 = vmul.f32 %v1451_v0, %v1445_v43  ;;  %v1453_v3 = vpop.eup %1452 }
 0x235   : > { %v786_v5 = vsel %vm646_vm1, %v1453_v3, 0.0 }
 0x236   : > { %v677_v4 = vpack.c.bf16 %v676_v1, %v676_v1 }
 0x238   : > { %1297 = vmatmul.msk.bf16.vlgmr.msra.gmra.mxu2 %vm646_vm1, %v677_v4 }
 0x239   : > { %787 = vadd.xlane.f32.xlu2 %v786_v5  ;;  %861 = vmatpush.bf16.msra.mxu2 %v852_v7  ;;  %v1367_v5 = vld [vmem:[%s1889_s10 + $0x8] sm:$0xff]  ;;  %v1375_v7 = vld [vmem:[%s1891_s12 + $0x38] sm:$0xff] }
 0x23a   : > { %1031 = vmatpush.bf16.msrb.mxu0 %v1367_v5 }
 0x23e   : > { %1032 = vmatpush.bf16.msrb.mxu0 %v1366_v6 }
 0x294   : > { %v732_v10 = vpop.xlane.xlu2 %731 }
 0x295   : > { %1454 = vrcp.f32 %v732_v10  ;;  %v1374_v10 = vld [vmem:[%s1891_s12 + $0x30] sm:$0xff] }
 0x29b   : > { %v1455_v11 = vpop.eup %1454 }
 0x29c   : > { %v734_v12 = vmul.f32 %v1455_v11, %v1447_v53 }
 0x29e   : > { %v735_v13 = vpack.c.bf16 %v734_v12, %v734_v12  ;;  %v1373_v12 = vld [vmem:[%s1891_s12 + $0x28] sm:$0xff] }
 0x2a0   : > { %1301 = vmatmul.msk.bf16.vlgmr.msrb.gmra.mxu2 %vm646_vm1, %v735_v13  ;;  %v1372_v13 = vld [vmem:[%s1891_s12 + $0x20] sm:$0xff] }
 0x2a1   : > { %949 = vmatpush.bf16.msrb.mxu2 %v940_v32 }
 0x2a4   : > { %v844_v15 = vpop.xlane.xlu2 %843 }
 0x2a5   : > { %1456 = vrcp.f32 %v844_v15 }
 0x2ab   : > { %v1457_v17 = vpop.eup %1456 }
 0x2ac   : > { %v846_v18 = vmul.f32 %v1457_v17, %v1449_v62  ;;  %v788_v19 = vpop.xlane.xlu2 %787 }
 0x2ad   : > { %1458 = vrcp.f32 %v788_v19  ;;  %v1370_v19 = vld [vmem:[%s1891_s12 + $0x10] sm:$0xff] }
 0x2ae   : > { %v847_v20 = vpack.c.bf16 %v846_v18, %v846_v18  ;;  %1460 = vrcp.f32 %v1550_v57  ;;  %v1442_v57 = vld [vmem:[%s1893_s14] ss:$0 sm:$0xff] }
 0x2b0   : > { %1309 = vmatmul.msk.bf16.vlgmr.msra.gmra.mxu2 %vm646_vm1, %v847_v20 }
 0x2b3   : > { %v1459_v21 = vpop.eup %1458 }
 0x2b4   : > { %v790_v22 = vmul.f32 %v1459_v21, %v1453_v3  ;;  %v1461_v58 = vpop.eup %1460 }
 0x2b5   : > { %v966_v59 = vmul.f32 32.0, %v1461_v58  ;;  %vm970_vm4 = vweird.f32 %v1461_v58 }
 0x2b6   : > { %v791_v23 = vpack.c.bf16 %v790_v22, %v790_v22  ;;  %v1438_v22 = vld [vmem:[%s1887_s8] ss:$0 sm:$0xff] }
 0x2b7   : > { %v967_v60 = vsub.f32 1.0, %v966_v59 }
 0x2b8   : > { %1305 = vmatmul.msk.bf16.vlgmr.msra.gmra.mxu1 %vm646_vm1, %v791_v23 }
 0x2b9   : > { %v968_v61 = vmul.f32 %v1461_v58, %v967_v60  ;;  %1108 = vmatpush.bf16.msra.mxu1 %v1375_v7  ;;  %v1443_v60 = vld [vmem:[%s1894_s15] ss:$0 sm:$0xff] }
 0x2bb   : > { %v694_v24 = vpop.f32.mrf.mxu2  ;;  %v969_v62 = vadd.f32 %v1461_v58, %v968_v61 }
 0x2bc   : > { %v867_v26 = vpack.c.bf16 %v694_v24, %v694_v24  ;;  %v1439_v24 = vld [vmem:[%s1888_s9] ss:$0 sm:$0xff] }
 0x2bd   : > { %v1783_v63 = vsel %vm970_vm4, %v1461_v58, %v969_v62  ;;  %1109 = vmatpush.bf16.msra.mxu1 %v1374_v10 }
 0x2c1   : > { %1110 = vmatpush.bf16.msra.mxu1 %v1373_v12 }
 0x2c3   : > { %v696_v25 = vpop.f32.mrf.mxu2 }
 0x2c5   : > { %1111 = vmatpush.bf16.msra.mxu1 %v1372_v13 }
 0x2c8   : > { %1312 = vmatmul.msk.bf16.vlgmr.msrb.gmra.mxu1 %vm646_vm1, %v867_v26 }
 0x2c9   : > { %1112 = vmatpush.bf16.msra.mxu1 %v1371_v16 }
 0x2cd   : > { %1113 = vmatpush.bf16.msra.mxu1 %v1370_v19 }
 0x2d1   : > { %1114 = vmatpush.bf16.msra.mxu1 %v1369_v29 }
 0x2d5   : > { %1115 = vmatpush.bf16.msra.mxu1 %v1368_v30 }
 0x323   : > { %v751_v33 = vpop.f32.mrf.mxu2 }
 0x324   : > { %v869_v34 = vpack.c.bf16 %v751_v33, %v751_v33 }
 0x326   : > { %1311 = vmatmul.msk.bf16.vlgmr.msra.gmra.mxu0 %vm646_vm1, %v869_v34 }
 0x32b   : > { %v753_v35 = vpop.f32.mrf.mxu2 }
 0x333   : > { %v863_v36 = vpop.f32.mrf.mxu2 }
 0x334   : > { %v933_v37 = vpack.c.bf16 %v863_v36, %v863_v36 }
 0x335   : > { %v807_v38 = vpop.f32.mrf.mxu1 }
 0x336   : > { %v910_v39 = vpack.c.bf16 %v807_v38, %v807_v38  ;;  %1316 = vmatmul.msk.bf16.vlgmr.msrb.gmra.mxu2 %vm646_vm1, %v933_v37  ;;  %v1441_v37 = vld [vmem:[%s1892_s13] ss:$0 sm:$0xff] }
 0x338   : > { %1314 = vmatmul.msk.bf16.vlgmr.msrb.gmra.mxu3 %vm646_vm1, %v910_v39 }
 0x33b   : > { %v865_v40 = vpop.f32.mrf.mxu2 }
 0x33d   : > { %v809_v41 = vpop.f32.mrf.mxu1 }
 0x345   : > { %v906_v42 = vpop.f32.mrf.mxu1 }
 0x34d   : > { %v908_v43 = vpop.f32.mrf.mxu1 }
 0x3a3   : > { %v887_v44 = vpop.f32.mrf.mxu0 }
 0x3a4   : > { %v907_v47 = vadd.f32 %v906_v42, %v887_v44 }
 0x3ab   : > { %v889_v45 = vpop.f32.mrf.mxu0 }
 0x3b9   : > { %v951_v46 = vpop.f32.mrf.mxu2 }
 0x3bb   : > { %v928_v48 = vpop.f32.mrf.mxu3 }
 0x3bc   : > { %v932_v49 = vadd.f32 %v928_v48, %v907_v47 }
 0x3be   : > { %v955_v51 = vadd.f32 %v951_v46, %v932_v49 }
 0x3c0   : > { %v960_v52 = vadd.f32 %v1437_v50, %v955_v51 }
 0x3c1   : > { %v953_v53 = vpop.f32.mrf.mxu2 }
 0x3c2   : > { %v961_v54 = vadd.f32 %v960_v52, %v1705_v2 }
 0x3c3   : > { %v930_v55 = vpop.f32.mrf.mxu3 }
 0x3c4   : > { %v962_v56 = vsel %vm622_vm0, %v961_v54, 0.0 }
 0x3c5   : > { %963 = vadd.xlane.f32.xlu2 %v962_v56 }
 0x438   : > { %v964_v0 = vpop.xlane.xlu2 %963 }
 0x439   : > { %v972_v1 = vmul.f32 %v1783_v63, %v964_v0 }
 0x43b   : > { %v973_v3 = vsub.f32 %v961_v54, %v972_v1 }
 0x43d   : > { %v974_v4 = vmul.f32 %v973_v3, %v973_v3 }
 0x43f   : > { %v975_v2 = vsel %vm622_vm0, %v974_v4, 0.0 }
 0x440   : > { %976 = vadd.xlane.f32.xlu1 %v975_v2 }
 0x4b3   : > { %v977_v8 = vpop.xlane.xlu1 %976 }
 0x4b4   : > { %v978_v9 = vmul.f32 %v977_v8, %v1783_v63 }
 0x4b6   : > { %v979_v11 = vadd.f32 1e-05, %v978_v9 }
 0x4b8   : > { %1462 = vrsqrt.f32 %v979_v11  ;;  %vm986_vm6 = vweird.f32 %v979_v11 }
 0x4be   : > { %v1463_v14 = vpop.eup %1462 }
 0x4bf   : > { %v981_v15 = vmul.f32 %v1463_v14, %v979_v11  ;;  %vm987_vm5 = vweird.f32 %v1463_v14 }
 0x4c0   : > { %vm988_vm7 = vmor %vm986_vm6, %vm987_vm5 }
 0x4c1   : > { %v982_v17 = vmul.f32 %v1463_v14, %v981_v15 }
 0x4c3   : > { %v983_v18 = vmul.f32 0.5, %v982_v17 }
 0x4c5   : > { %v984_v20 = vsub.f32 1.5, %v983_v18 }
 0x4c7   : > { %v985_v21 = vmul.f32 %v1463_v14, %v984_v20 }
 0x4c9   : > { %v989_v23 = vsel %vm988_vm7, %v1463_v14, %v985_v21 }
 0x4ca   : > { %v990_v25 = vmul.f32 %v989_v23, %v973_v3 }
 0x4cc   : > { %v995_v26 = vmul.f32 %v1438_v22, %v990_v25 }
 0x4ce   : > { %v1000_v27 = vadd.f32 %v1439_v24, %v995_v26 }
 0x4d0   : > { %v1001_v28 = vpack.c.bf16 %v1000_v27, %v1000_v27 }
 0x4d2   : > { %1325 = vmatmul.msk.bf16.vlgmr.msrb.gmra.mxu0 %vm622_vm0, %v1001_v28 }
 0x54f   : > { %v1034_v32 = vpop.f32.mrf.mxu0 }
 0x550   : > { %v1035_v33 = vadd.f32 %v1440_v31, %v1034_v32 }
 0x552   : > { %v1038_v34 = vmax.f32 %v1035_v33, 0.0 }
 0x554   : > { %v1039_v35 = vpack.c.bf16 %v1038_v34, %v1038_v34 }
 0x556   : > { %1116 = vmatmul.bf16.vlgmr.msra.gmra.mxu1 %v1039_v35 }
 0x557   : > { %v1036_v36 = vpop.f32.mrf.mxu0 }
 0x5d3   : > { %v1117_v38 = vpop.f32.mrf.mxu1 }
 0x5d4   : > { %v1118_v39 = vadd.f32 %v1441_v37, %v1117_v38 }
 0x5d6   : > { %v1121_v40 = vadd.f32 %v1118_v39, %v1000_v27 }
 0x5d8   : > { %v1122_v41 = vsel %vm622_vm0, %v1121_v40, 0.0 }
 0x5d9   : > { %1123 = vadd.xlane.f32.xlu2 %v1122_v41 }
 0x5db   : > { %v1119_v42 = vpop.f32.mrf.mxu1 }
 0x64c   : > { %v1124_v43 = vpop.xlane.xlu2 %1123 }
 0x64d   : > { %v1125_v44 = vmul.f32 %v1124_v43, %v1783_v63 }
 0x64f   : > { %v1126_v45 = vsub.f32 %v1121_v40, %v1125_v44 }
 0x651   : > { %v1127_v46 = vmul.f32 %v1126_v45, %v1126_v45 }
 0x653   : > { %v1128_v47 = vsel %vm622_vm0, %v1127_v46, 0.0 }
 0x654   : > { %1129 = vadd.xlane.f32.xlu0 %v1128_v47 }
 0x6c7   : > { %v1130_v48 = vpop.xlane.xlu0 %1129 }
 0x6c8   : > { %v1131_v49 = vmul.f32 %v1130_v48, %v1783_v63 }
 0x6ca   : > { %v1132_v50 = vadd.f32 1e-05, %v1131_v49 }
 0x6cc   : > { %1464 = vrsqrt.f32 %v1132_v50  ;;  %vm1139_vm9 = vweird.f32 %v1132_v50 }
 0x6d2   : > { %v1465_v51 = vpop.eup %1464 }
 0x6d3   : > { %v1134_v52 = vmul.f32 %v1465_v51, %v1132_v50  ;;  %vm1140_vm8 = vweird.f32 %v1465_v51 }
 0x6d4   : > { %vm1141_vm10 = vmor %vm1139_vm9, %vm1140_vm8 }
 0x6d5   : > { %v1135_v53 = vmul.f32 %v1465_v51, %v1134_v52 }
 0x6d7   : > { %v1136_v54 = vmul.f32 0.5, %v1135_v53 }
 0x6d9   : > { %v1137_v55 = vsub.f32 1.5, %v1136_v54 }
 0x6db   : > { %v1138_v56 = vmul.f32 %v1465_v51, %v1137_v55 }
 0x6dd   : > { %v1142_v58 = vsel %vm1141_vm10, %v1465_v51, %v1138_v56 }
 0x6de   : > { %v1143_v59 = vmul.f32 %v1142_v58, %v1126_v45 }
 0x6e0   : > { %v1148_v61 = vmul.f32 %v1442_v57, %v1143_v59 }
 0x6e2   : > { %v1153_v62 = vadd.f32 %v1443_v60, %v1148_v61 }
 0x6e4   : > { %1154 = vst.msk [vmem:[%s575_s1] sm:$0xff] %vm622_vm0, %v1153_v62 }
 0x6e5   : > { %1493 = shalt.err (!%p1490_p5)
}
 0x6e6   : > { %1376 = dma.vmem_to_hbm [thread:$0]  (%p1676_p4), %s1170_s24, 128, %s1172_s2, %s1156_s29  }
 0x6e7 PF: > { %p1382_p6 = scmp.ge.s32.totalorder %s1544_s26, 2  ;;  %s1183_s25 = sand.u32 1, %s1524_s21  }
 0x6e8   : > { %s1184_s28 = scalar_lea.sflag [#allocation3], %s1183_s25 }
 0x6e9   : > { %p1379_p7 = pnand %p1382_p6, %p1683_p8 }
 0x6eb   : > { %p1380_p9 = pneg %p1379_p7 }
 0x6ed   : > { %1519 = dma.done.wait (%p1380_p9), %s1184_s28, 128  }
 0x6ee   : > { %1521 = vsyncadd (%p1380_p9), %s1184_s28, 4294967168  ;;  %s29_s26 = sadd.s32 1, %s1544_s26   ;;  %s1914_s19 = sld [smem:[#allocation5_spill]] }
 0x6ef   : > { %p26_p10 = scmp.ge.s32.totalorder %s29_s26, 4   ;;  %s1915_s23 = sld [smem:[#allocation9_spill]] }
 0x6f0   : > { %s1916_s24 = sld [smem:[#allocation6_spill]]  ;;  %s1918_s21 = smov %s1528_s22 }
 0x6f1   : > { %s1917_s25 = sld [smem:[#allocation7_spill]]  ;;  %28 = sbr.rel (!%p26_p10) target bundleno = 8 (0x8), region = 137 }
 0x6f4   : > { %s1919_s22 = smov %s1914_s19 }
 0x6f6   :  { %1190 = vsyncpa [#allocation3], 1 }
 0x6f7   :  { %1192 = vsyncpa [#allocation3 + $0x1], 1 }

</bundles_post_ra>
